<compile_context>
chip_gen: v7x
topology: tpu7x:2x2x1
jax: 0.10.0
libtpu: 0.0.40
codegen_flags: <defaults>
</compile_context>

<pallas_src>
import math
import functools

import numpy as np
import jax
import jax.numpy as jnp
from jax.experimental import pallas as pl
from jax.experimental.pallas import tpu as pltpu


# ----------------------------------------------------------------------------
# Synthetic encoder: out[e] = normalize(x[e] @ W[e] + b[e]) for e in {q, k}, as
# ONE pallas_call (both encoders stacked on a leading parallel axis), with the
# contraction (feature) axis tiled and accumulated in f32; bf16 on the MXU.
# L2 normalization (torch F.normalize, eps=1e-12) is fused into the epilogue.
# ----------------------------------------------------------------------------
def _encoder_kernel(x_ref, w_ref, b_ref, o_ref, acc_ref):
    f = pl.program_id(1)

    @pl.when(f == 0)
    def _():
        acc_ref[...] = jnp.zeros_like(acc_ref)

    acc_ref[...] += jnp.dot(x_ref[0], w_ref[0],
                            preferred_element_type=jnp.float32)

    @pl.when(f == pl.num_programs(1) - 1)
    def _():
        y = acc_ref[...] + b_ref[0]
        o_ref[0] = y / jnp.maximum(
            jnp.sqrt(jnp.sum(y * y, axis=1, keepdims=True)), 1e-12)


def encode_pair(x2, w2, b2, *, tile_f=512):
    """x2: (2, Bp, F) bf16, w2: (2, F, D) bf16, b2: (2, 1, D) f32
    -> (2, Bp, D) f32, L2-normalized along the feature axis."""
    _, Bp, F = x2.shape
    D = w2.shape[-1]
    tile_f = min(tile_f, F)
    assert F % tile_f == 0
    return pl.pallas_call(
        _encoder_kernel,
        out_shape=jax.ShapeDtypeStruct((2, Bp, D), jnp.float32),
        grid_spec=pltpu.PrefetchScalarGridSpec(
            num_scalar_prefetch=0,
            grid=(2, F // tile_f),
            in_specs=[
                pl.BlockSpec((1, Bp, tile_f), lambda e, f: (e, 0, f)),
                pl.BlockSpec((1, tile_f, D), lambda e, f: (e, f, 0)),
                pl.BlockSpec((1, 1, D), lambda e, f: (e, 0, 0)),
            ],
            out_specs=pl.BlockSpec((1, Bp, D), lambda e, f: (e, 0, 0)),
            scratch_shapes=[pltpu.VMEM((Bp, D), jnp.float32)],
        ),
        compiler_params=pltpu.CompilerParams(
            dimension_semantics=("parallel", "arbitrary")),
    )(x2, w2, b2)


# ----------------------------------------------------------------------------
# Main LACL kernel: one fused MXU dot per queue tile for the cached, 1/T-scaled
# bf16 [qn; kn], scalar-indexed partition masking from contras_table[labels],
# bf16 l_neg writeback, and online-softmax statistics for the KL divergence
# used by _search_enqueue_samples.
# Grid = (n_split, tiles_per_split): leading axis "parallel" (both TCs on v7x),
# trailing axis "arbitrary" streams the queue in bf16 tiles.
# ----------------------------------------------------------------------------
def _lacl_kernel(q_ref, k_ref, lab_ref, ctab_ref, queue_ref,
                 lpos_ref, lneg_ref, lse_ref, ws_ref,
                 qk_sc, m_sc, l_sc, ws_sc,
                 *, inv_T, e_minus_1, inv_denom_q, n_per_part):
    h = pl.program_id(0)
    t = pl.program_id(1)
    ntph = pl.num_programs(1)
    Bp = q_ref.shape[0]
    tile = queue_ref.shape[1]
    n_k = ctab_ref.shape[1]

    @pl.when(t == 0)
    def _():
        # q/k arrive already L2-normalized from the encoder.  Cache them
        # stacked, pre-scaled by 1/T, in bf16 for the fused per-tile dot.
        qn = q_ref[...]
        kn = k_ref[...]
        lpos_ref[0] = jnp.sum(qn * kn, axis=1, keepdims=True) * inv_T
        qk_sc[...] = (jnp.concatenate([qn, kn], axis=0) * inv_T).astype(qk_sc.dtype)
        m_sc[...] = jnp.full_like(m_sc, -jnp.inf)
        l_sc[...] = jnp.zeros_like(l_sc)
        ws_sc[...] = jnp.zeros_like(ws_sc)

    # One MXU dot for both q and k against the streamed bf16 queue tile.
    # qk_sc already carries the 1/T factor, so res == s/T directly.
    res = jnp.dot(qk_sc[...], queue_ref[...],
                  preferred_element_type=jnp.float32)      # (2*Bp, tile) f32
    s_q = res[:Bp]
    s_k = res[Bp:]

    # tile_kn divides N, so this whole tile lies inside queue partition kk.
    kk = ((h * ntph + t) * tile) // n_per_part              # scalar int32

    # Column mask from contras_table[labels][:, kk]: one (Bp, n_k) select,
    # one broadcast where -- no K-loop of full-tile compares.
    sel = jax.lax.broadcasted_iota(jnp.int32, (Bp, n_k), 1) == kk
    cm = jnp.sum(jnp.where(sel, ctab_ref[...], 0.0), axis=1, keepdims=True)
    lneg_ref[...] = jnp.where(cm > 0.5, -jnp.inf, s_q).astype(lneg_ref.dtype)

    # Online logsumexp for p_dis = softmax((k @ queue) / T).
    m_prev = m_sc[...]
    m_new = jnp.maximum(m_prev, jnp.max(s_k, axis=1, keepdims=True))
    l_sc[...] = (jnp.exp(m_prev - m_new) * l_sc[...]
                 + jnp.sum(jnp.exp(s_k - m_new), axis=1, keepdims=True))
    m_sc[...] = m_new

    # q_dis probabilities are analytic (hot partition -> e/denom, cold -> 1/denom).
    # Whole tile is in partition kk, so the hot contribution is just a row flag.
    row_sum = jnp.sum(s_k, axis=1, keepdims=True)
    hot = lab_ref[...] == kk                                # (Bp, 1) bool
    ws_sc[...] += inv_denom_q * row_sum * jnp.where(hot, 1.0 + e_minus_1, 1.0)

    @pl.when(t == ntph - 1)
    def _():
        lse_ref[0] = m_sc[...] + jnp.log(l_sc[...])
        ws_ref[0] = ws_sc[...]


def lacl_forward(q_norm, k_norm, labels, ctab_rows, queue_bf, *, K, N, T,
                 tile_kn=4096, n_split=None, buffer_count=None):
    """q_norm/k_norm: (Bp, D) f32 L2-normalized (Bp % 8 == 0), labels: (Bp,) int,
    ctab_rows = contras_table[labels]: (Bp, K) f32, queue_bf: (D, K*N) bf16.
    Returns (l_pos/T (Bp,1) f32, l_neg/T (Bp,K*N) bf16, kl (Bp,) f32)."""
    Bp, D = q_norm.shape
    assert Bp % 8 == 0, "pad the batch to a multiple of 8 sublanes"
    KN = K * N
    assert queue_bf.shape == (D, KN)
    assert N % 128 == 0

    # Generation gating: splitting the queue across TensorCores and 3-deep queue
    # buffering only pay off on v7x (2 TCs, ~2.2x HBM BW).  v5e/v6e: 1 TC.
    if n_split is None or buffer_count is None:
        try:
            kind = jax.devices()[0].device_kind.lower()
        except Exception:
            kind = ""
        is_v7 = "7" in kind
        if n_split is None:
            n_split = 2 if is_v7 else 1
        if buffer_count is None:
            buffer_count = 3 if is_v7 else 2

    if n_split < 1 or K % n_split != 0:
        n_split = 1
    per_split = KN // n_split

    # Snap tile_kn to the largest multiple of 128 that divides N and is <= the
    # request, so a queue tile never straddles a partition boundary.
    cap = min(tile_kn, N, per_split)
    best = 128
    d = 128
    while d <= cap:
        if N % d == 0:
            best = d
        d += 128
    tile_kn = best
    ntph = per_split // tile_kn

    E = math.e
    denom_q = N * E + (KN - N)
    q_hot = E / denom_q
    q_cold = 1.0 / denom_q
    qlogq = N * q_hot * math.log(q_hot) + (KN - N) * q_cold * math.log(q_cold)

    kernel = functools.partial(
        _lacl_kernel,
        inv_T=1.0 / T,
        e_minus_1=E - 1.0,
        inv_denom_q=1.0 / denom_q,
        n_per_part=N,
    )

    # VMEM budget: buffered queue tiles + double-buffered bf16 l_neg tiles +
    # small residents/scratch; clamp to [8, 32] MiB (v7x only has 64 MiB VMEM).
    tiles_bytes = buffer_count * D * tile_kn * 2 + 2 * Bp * tile_kn * 2
    resident_bytes = 2 * Bp * D * 4 + Bp * 4 + Bp * K * 4 + 4 * n_split * Bp * 4
    scratch_bytes = 2 * Bp * D * 2 + 3 * Bp * 4
    vmem_limit = int(min(max(2 * (tiles_bytes + resident_bytes + scratch_bytes),
                             8 * 1024 * 1024), 32 * 1024 * 1024))

    queue_kwargs = {}
    if buffer_count > 2:
        queue_kwargs["pipeline_mode"] = pl.Buffered(buffer_count)

    grid_spec = pltpu.PrefetchScalarGridSpec(
        num_scalar_prefetch=0,
        grid=(n_split, ntph),
        in_specs=[
            pl.BlockSpec((Bp, D), lambda h, t: (0, 0)),                # normalized q
            pl.BlockSpec((Bp, D), lambda h, t: (0, 0)),                # normalized k
            pl.BlockSpec((Bp, 1), lambda h, t: (0, 0)),                # labels
            pl.BlockSpec((Bp, K), lambda h, t: (0, 0)),                # contras_table[labels]
            pl.BlockSpec((D, tile_kn), lambda h, t: (0, h * ntph + t),
                         **queue_kwargs),                              # bf16 queue tile
        ],
        out_specs=[
            pl.BlockSpec((1, Bp, 1), lambda h, t: (h, 0, 0)),          # l_pos / T (per split)
            pl.BlockSpec((Bp, tile_kn), lambda h, t: (0, h * ntph + t)),  # l_neg / T (bf16)
            pl.BlockSpec((1, Bp, 1), lambda h, t: (h, 0, 0)),          # partial logsumexp
            pl.BlockSpec((1, Bp, 1), lambda h, t: (h, 0, 0)),          # partial sum q*sT
        ],
        scratch_shapes=[
            pltpu.VMEM((2 * Bp, D), jnp.bfloat16),   # cached, stacked [qn; kn] / T
            pltpu.VMEM((Bp, 1), jnp.float32),        # running max
            pltpu.VMEM((Bp, 1), jnp.float32),        # running sum(exp)
            pltpu.VMEM((Bp, 1), jnp.float32),        # running sum(q*sT)
        ],
    )

    lpos, lneg, lse_h, ws_h = pl.pallas_call(
        kernel,
        out_shape=(
            jax.ShapeDtypeStruct((n_split, Bp, 1), jnp.float32),
            jax.ShapeDtypeStruct((Bp, KN), jnp.bfloat16),
            jax.ShapeDtypeStruct((n_split, Bp, 1), jnp.float32),
            jax.ShapeDtypeStruct((n_split, Bp, 1), jnp.float32),
        ),
        grid_spec=grid_spec,
        compiler_params=pltpu.CompilerParams(
            dimension_semantics=("parallel", "arbitrary"),
            vmem_limit_bytes=vmem_limit,
        ),
    )(q_norm, k_norm, labels.reshape(Bp, 1).astype(jnp.int32), ctab_rows, queue_bf)

    # Merge per-split online-softmax partials (tiny wrapper glue):
    # KL(q || p) = sum q log q - sum q*sT + logsumexp(sT)
    lse_h = lse_h[:, :, 0]                         # (n_split, Bp)
    m = jnp.max(lse_h, axis=0)
    lse = m + jnp.log(jnp.sum(jnp.exp(lse_h - m), axis=0))
    ws = jnp.sum(ws_h[:, :, 0], axis=0)
    kl = qlogq - ws + lse
    return lpos[0], lneg, kl


if __name__ == "__main__":
    # Small, LACL-consistent shapes.
    B, C, H, W = 2, 4, 16, 16
    DIM = 128          # feature dimension (module default)
    K = 4              # number of classes / queue partitions (k)
    N = 1024           # per-class queue length (small stand-in for n=10240)
    T = 0.07
    MOM = 0.999
    F = C * H * W
    Bp = 8             # batch padded to a sublane multiple for unmasked vld/vst

    key = jax.random.PRNGKey(0)
    k_imq, k_imk, k_w, k_b, k_queue, k_lab = jax.random.split(key, 6)

    im_q = jax.random.normal(k_imq, (B, C, H, W), jnp.float32)
    im_k = jax.random.normal(k_imk, (B, C, H, W), jnp.float32)
    labels = jax.random.randint(k_lab, (B,), 0, K)

    # Encoder params; encoder_k is initialized as a copy of encoder_q (as in
    # LACL.__init__), so the momentum update below is a no-op but kept for fidelity.
    w_q = jax.random.normal(k_w, (F, DIM), jnp.float32) / math.sqrt(F)
    b_q = jax.random.normal(k_b, (DIM,), jnp.float32) * 0.01
    w_k, b_k = w_q, b_q
    w_k = MOM * w_k + (1.0 - MOM) * w_q
    b_k = MOM * b_k + (1.0 - MOM) * b_q

    # Queue buffer: randn(dim, K*N), L2-normalized along dim=0; streamed in bf16.
    queue = jax.random.normal(k_queue, (DIM, K * N), jnp.float32)
    queue = queue / jnp.maximum(jnp.linalg.norm(queue, axis=0, keepdims=True), 1e-12)
    queue_bf = queue.astype(jnp.bfloat16)          # 'c (k n)' layout, bf16 HBM stream

    # contras_table[i, j] = True iff partition j must be masked for label i.
    contras_table = jnp.eye(K, dtype=bool)

    # Flatten NCHW images, pad the batch to Bp sublanes, and run both encoders
    # (matmul + bias + fused L2 normalize) in a single Pallas call.
    pad = Bp - B
    x_q = jnp.pad(im_q.reshape(B, F), ((0, pad), (0, 0)))
    x_k = jnp.pad(im_k.reshape(B, F), ((0, pad), (0, 0)))
    labels_p = jnp.pad(labels, (0, pad))                        # padded rows -> label 0
    ctab_rows = contras_table[labels_p].astype(jnp.float32)     # (Bp, K)

    x2 = jnp.stack([x_q, x_k], axis=0).astype(jnp.bfloat16)
    w2 = jnp.stack([w_q, w_k], axis=0).astype(jnp.bfloat16)
    b2 = jnp.stack([b_q, b_k], axis=0).reshape(2, 1, DIM)

    feats = encode_pair(x2, w2, b2)
    q_norm, k_norm = feats[0], feats[1]                         # (Bp, DIM) f32, normalized

    l_pos_p, l_neg_p, kl_p = lacl_forward(
        q_norm, k_norm, labels_p, ctab_rows, queue_bf, K=K, N=N, T=T)

    # l_pos and l_neg are returned separately (no HBM concatenate copy); the
    # downstream cross-entropy with target 0 consumes column 0 = l_pos.
    l_pos = l_pos_p[:B]
    l_neg = l_neg_p[:B]
    kl = kl_p[:B]
    k_out = k_norm[:B]
    targets = jnp.zeros((B,), dtype=jnp.int32)

    # _search_enqueue_samples selection (glue around the kernel-computed KL).
    kl_mean = jnp.mean(kl)
    enqueue_mask = kl <= kl_mean
    # TODO(synk): _dequeue_and_enqueue's data-dependent, variable-size queue
    # scatter (torch.unique + per-class pointers) is not expressible with static
    # shapes; it is a buffer side-effect and does not affect (logits, targets).

    jax.block_until_ready((l_pos, l_neg, targets, kl, enqueue_mask, k_out))

    # --- plain-JAX reference check ------------------------------------------
    # Encoder check (bf16 matmul + bias + normalize).
    qfr = jnp.dot(x_q[:B].astype(jnp.bfloat16), w_q.astype(jnp.bfloat16),
                  preferred_element_type=jnp.float32) + b_q
    kfr = jnp.dot(x_k[:B].astype(jnp.bfloat16), w_k.astype(jnp.bfloat16),
                  preferred_element_type=jnp.float32) + b_k
    qn_e = qfr / jnp.maximum(jnp.linalg.norm(qfr, axis=1, keepdims=True), 1e-12)
    kn_e = kfr / jnp.maximum(jnp.linalg.norm(kfr, axis=1, keepdims=True), 1e-12)
    assert np.allclose(np.asarray(q_norm[:B]), np.asarray(qn_e), rtol=5e-3, atol=5e-3)
    assert np.allclose(np.asarray(k_norm[:B]), np.asarray(kn_e), rtol=5e-3, atol=5e-3)

    # LACL-head check from the kernel-normalized features (isolates the head).
    qn_r, kn_r = q_norm[:B], k_norm[:B]
    lpos_r = jnp.sum(qn_r * kn_r, axis=1, keepdims=True) / T
    sq_r = jnp.dot(qn_r.astype(jnp.bfloat16), queue_bf,
                   preferred_element_type=jnp.float32) / T
    cmask_r = jnp.repeat(contras_table[labels].astype(jnp.float32), N, axis=1)
    lneg_r = jnp.where(cmask_r > 0.5, -jnp.inf, sq_r)
    sk_r = jnp.dot(kn_r.astype(jnp.bfloat16), queue_bf,
                   preferred_element_type=jnp.float32) / T
    p_r = jax.nn.softmax(sk_r, axis=-1)
    hmask_r = jnp.repeat(jax.nn.one_hot(labels, K, dtype=jnp.float32), N, axis=1)
    qd_r = jax.nn.softmax(hmask_r, axis=-1)
    kl_r = jnp.sum(qd_r * (jnp.log(qd_r) - jnp.log(p_r)), axis=-1)

    assert np.allclose(np.asarray(l_pos), np.asarray(lpos_r), rtol=1e-2, atol=1e-2)
    assert np.allclose(np.asarray(l_neg, dtype=np.float32), np.asarray(lneg_r),
                       rtol=2e-2, atol=2e-2)
    assert np.allclose(np.asarray(kl), np.asarray(kl_r), rtol=2e-2, atol=2e-2)

    print("KERNEL_OK")
</pallas_src>

<mosaic_0001>
module attributes {stable_mosaic.version = 11 : i64} {
  func.func @_encoder_kernel(%arg0: i32, %arg1: i32, %arg2: memref<1x8x512xbf16, #tpu.memory_space<vmem>>, %arg3: memref<1x512x128xbf16, #tpu.memory_space<vmem>>, %arg4: memref<1x1x128xf32, #tpu.memory_space<vmem>>, %arg5: memref<1x8x128xf32, #tpu.memory_space<vmem>>, %arg6: memref<8x128xf32, #tpu.memory_space<vmem>>) attributes {dimension_semantics = [#tpu.dimension_semantics<parallel>, #tpu.dimension_semantics<arbitrary>], iteration_bounds = array<i64: 2, 2>, scalar_prefetch = 0 : i64, scratch_operands = 1 : i64, tpu.core_type = #tpu.core_type<tc>, window_params = [{transform_indices = @transform_0, window_bounds = array<i64: 1, 8, 512>}, {transform_indices = @transform_1, window_bounds = array<i64: 1, 512, 128>}, {transform_indices = @transform_2, window_bounds = array<i64: 1, 1, 128>}, {transform_indices = @transform_3, window_bounds = array<i64: 1, 8, 128>}]} {
    %c0_i32 = arith.constant 0 : i32
    %0 = arith.cmpi eq, %arg1, %c0_i32 : i32
    %1 = arith.extui %0 : i1 to i32
    %c0_i32_0 = arith.constant 0 : i32
    %2 = arith.cmpi ne, %1, %c0_i32_0 : i32
    scf.if %2 {
      %cst_11 = arith.constant 0.000000e+00 : f32
      %14 = vector.broadcast %cst_11 : f32 to vector<8x128xf32>
      %c0_12 = arith.constant 0 : index
      %c0_13 = arith.constant 0 : index
      %15 = vector.load %arg6[%c0_12, %c0_13] : memref<8x128xf32, #tpu.memory_space<vmem>>, vector<8x128xf32>
      tpu.vector_store %arg6[%c0_12, %c0_13], %14 {strides = array<i32>} : memref<8x128xf32, #tpu.memory_space<vmem>>, vector<8x128xf32>,
    } else {
    }
    %c0 = arith.constant 0 : index
    %c0_1 = arith.constant 0 : index
    %3 = vector.load %arg6[%c0, %c0_1] : memref<8x128xf32, #tpu.memory_space<vmem>>, vector<8x128xf32>
    %c0_2 = arith.constant 0 : index
    %c0_3 = arith.constant 0 : index
    %c0_4 = arith.constant 0 : index
    %4 = vector.load %arg2[%c0_2, %c0_3, %c0_4] : memref<1x8x512xbf16, #tpu.memory_space<vmem>>, vector<1x8x512xbf16>
    %5 = vector.shape_cast %4 : vector<1x8x512xbf16> to vector<8x512xbf16>
    %c0_5 = arith.constant 0 : index
    %c0_6 = arith.constant 0 : index
    %c0_7 = arith.constant 0 : index
    %6 = vector.load %arg3[%c0_5, %c0_6, %c0_7] : memref<1x512x128xbf16, #tpu.memory_space<vmem>>, vector<1x512x128xbf16>
    %7 = vector.shape_cast %6 : vector<1x512x128xbf16> to vector<512x128xbf16>
    %cst = arith.constant dense<0.000000e+00> : vector<8x128xf32>
    %8 = tpu.matmul %5, %7, %cst {dimension_numbers = #tpu.dot_dimension_numbers<[1], [0], [0], [1], [0, 0, 1, 1], [], []>} : vector<8x512xbf16>, vector<512x128xbf16>, vector<8x128xf32> -> vector<8x128xf32>
    %9 = arith.addf %3, %8 : vector<8x128xf32>
    %c0_8 = arith.constant 0 : index
    %c0_9 = arith.constant 0 : index
    %10 = vector.load %arg6[%c0_8, %c0_9] : memref<8x128xf32, #tpu.memory_space<vmem>>, vector<8x128xf32>
    tpu.vector_store %arg6[%c0_8, %c0_9], %9 {strides = array<i32>} : memref<8x128xf32, #tpu.memory_space<vmem>>, vector<8x128xf32>,
    %c1_i32 = arith.constant 1 : i32
    %11 = arith.cmpi eq, %arg1, %c1_i32 : i32
    %12 = arith.extui %11 : i1 to i32
    %c0_i32_10 = arith.constant 0 : i32
    %13 = arith.cmpi ne, %12, %c0_i32_10 : i32
    scf.if %13 {
      %c0_11 = arith.constant 0 : index
      %c0_12 = arith.constant 0 : index
      %14 = vector.load %arg6[%c0_11, %c0_12] : memref<8x128xf32, #tpu.memory_space<vmem>>, vector<8x128xf32>
      %c0_13 = arith.constant 0 : index
      %c0_14 = arith.constant 0 : index
      %c0_15 = arith.constant 0 : index
      %15 = vector.load %arg4[%c0_13, %c0_14, %c0_15] : memref<1x1x128xf32, #tpu.memory_space<vmem>>, vector<1x1x128xf32>
      %16 = vector.shape_cast %15 : vector<1x1x128xf32> to vector<1x128xf32>
      %17 = vector.broadcast %16 : vector<1x128xf32> to vector<8x128xf32>
      %18 = arith.addf %14, %17 : vector<8x128xf32>
      %19 = arith.mulf %18, %18 : vector<8x128xf32>
      %cst_16 = arith.constant dense<0.000000e+00> : vector<8xf32>
      %20 = vector.multi_reduction <add>, %19, %cst_16 [1] : vector<8x128xf32> to vector<8xf32>
      %21 = vector.shape_cast %20 : vector<8xf32> to vector<8x1xf32>
      %22 = math.sqrt %21 : vector<8x1xf32>
      %cst_17 = arith.constant 9.99999996E-13 : f32
      %23 = vector.broadcast %cst_17 : f32 to vector<8x1xf32>
      %24 = arith.maximumf %22, %23 : vector<8x1xf32>
      %25 = vector.broadcast %24 : vector<8x1xf32> to vector<8x128xf32>
      %26 = arith.divf %18, %25 : vector<8x128xf32>
      %c0_18 = arith.constant 0 : index
      %c0_19 = arith.constant 0 : index
      %c0_20 = arith.constant 0 : index
      %27 = vector.load %arg5[%c0_18, %c0_19, %c0_20] : memref<1x8x128xf32, #tpu.memory_space<vmem>>, vector<1x8x128xf32>
      %28 = vector.shape_cast %27 : vector<1x8x128xf32> to vector<8x128xf32>
      %29 = vector.shape_cast %26 : vector<8x128xf32> to vector<1x8x128xf32>
      tpu.vector_store %arg5[%c0_18, %c0_19, %c0_20], %29 {strides = array<i32>} : memref<1x8x128xf32, #tpu.memory_space<vmem>>, vector<1x8x128xf32>,
    } else {
    }
    return
  }
  func.func @transform_0(%arg0: i32, %arg1: i32) -> (i32, i32, i32) {
    %c0_i32 = arith.constant 0 : i32
    %c0_i32_0 = arith.constant 0 : i32
    return %arg0, %c0_i32, %arg1 : i32, i32, i32
  }
  func.func @transform_1(%arg0: i32, %arg1: i32) -> (i32, i32, i32) {
    %c0_i32 = arith.constant 0 : i32
    %c0_i32_0 = arith.constant 0 : i32
    return %arg0, %arg1, %c0_i32 : i32, i32, i32
  }
  func.func @transform_2(%arg0: i32, %arg1: i32) -> (i32, i32, i32) {
    %c0_i32 = arith.constant 0 : i32
    %c0_i32_0 = arith.constant 0 : i32
    %c0_i32_1 = arith.constant 0 : i32
    return %arg0, %c0_i32, %c0_i32_0 : i32, i32, i32
  }
  func.func @transform_3(%arg0: i32, %arg1: i32) -> (i32, i32, i32) {
    %c0_i32 = arith.constant 0 : i32
    %c0_i32_0 = arith.constant 0 : i32
    %c0_i32_1 = arith.constant 0 : i32
    return %arg0, %c0_i32, %c0_i32_0 : i32, i32, i32
  }
}

</mosaic_0001>

<bundles_post_ra>
// kernel: tpu_custom_call.1
= control target key start
LH: loop header
LB: loop body
LE: loop exit
PB: predicated region body
PF: predicated region fallthrough
CT: control target
= control target key end

     0   :  { %s1577_s0 = inlined_call_operand.hbm [shape: bf16[2,8,1024], index: 0, kind: input, shape index: {}]   ;;  %s1578_s1 = inlined_call_operand.hbm [shape: bf16[2,1024,128], index: 1, kind: input, shape index: {}]   ;;  %s1579_s2 = inlined_call_operand.vmem [shape: f32[2,1,128], index: 2, kind: input, shape index: {}]   ;;  %s1580_s3 = inlined_call_operand.hbm [shape: f32[2,8,128], index: 3, kind: output, shape index: {}]  }
   0x1   :  { %1586 = sst [smem:[#allocation17_spill]] %s1577_s0 }
   0x2   :  { %8 = vsyncpa [#allocation4], 0 }
   0x3   :  { %10 = vsyncpa [#allocation4 + $0x1], 0 }
   0x4   :  { %11 = vsyncpa [#allocation7], 0 }
   0x5   :  { %13 = vsyncpa [#allocation7 + $0x1], 0 }
   0x6   :  { %14 = vsyncpa [#allocation5], 0 }
   0x7   :  { %16 = vsyncpa [#allocation5 + $0x1], 0  ;;  %s1251_s12 = smov 0   ;;  %s1253_s13 = smov 0  }
   0x8   :  { %s1255_s14 = smov 0   ;;  %s1257_s15 = smov 0  }
   0x9   :  { %s1259_s16 = smov 0   ;;  %s1261_s17 = smov 0  }
   0xa   :  { %s1263_s18 = smov 0   ;;  %s1265_s19 = smov 0  }
   0xb   :  { %s1267_s20 = smov 0   ;;  %s1269_s21 = smov 0  }
   0xc   :  { %s1271_s22 = smov 0  }
   0xd LB: > { %1587 = sst [smem:[#allocation12_spill]] %s1203_s17  ;;  %s784_s23 = sadd.s32 4294967295, %s1223_s22   ;;  %s1223_s22 = sphi %s1271_s22, %s22_s22   ;;  %s1219_s21 = sphi %s1269_s21, %s1617_s21   ;;  %s1215_s20 = sphi %s1267_s20, %s1616_s20   ;;  %s1211_s19 = sphi %s1265_s19, %s1615_s19   ;;  %s1207_s18 = sphi %s1263_s18, %s1614_s18   ;;  %s1203_s17 = sphi %s1261_s17, %s1606_s17   ;;  %s1199_s16 = sphi %s1259_s16, %s1613_s16   ;;  %s1195_s15 = sphi %s1257_s15, %s1612_s15   ;;  %s1191_s14 = sphi %s1255_s14, %s1611_s14   ;;  %s1187_s13 = sphi %s1253_s13, %s1610_s13   ;;  %s1183_s12 = sphi %s1251_s12, %s1609_s12  }
   0xe   : > { %s785_s24 = sadd.s32 4294967294, %s1223_s22   ;;  %s31_s25 = sadd.s32 1, %s1215_s20 }
   0xf   : > { %s34_s26 = sadd.s32 1, %s1219_s21  ;;  %p32_p0 = scmp.ge.s32.totalorder %s31_s25, 2 }
  0x10   : > { %s43_s27 = sadd.s32 1, %s1203_s17  ;;  %p50_p1 = scmp.ne.s32.totalorder %s1203_s17, %s1199_s16 }
  0x11   : > { %p51_p2 = scmp.eq.s32.totalorder %s1223_s22, 0  ;;  %s1619_s25 = smov (%p32_p0, %s31_s25), 0 }
  0x12   : > { %1588 = sst [smem:[#allocation13_spill]] %s1619_s25  ;;  %s1621_s26 = smov (!%p32_p0, %s34_s26), %s1219_s21 }
  0x13   : > { %s39_s28 = ssub.s32 %s1215_s20, %s1619_s25  ;;  %p1317_p3 = por %p51_p2, %p50_p1 }
  0x14   : > { %p36_p4 = scmp.ge.s32.totalorder %s1621_s26, 2  ;;  %p56_p5 = scmp.ne.s32.totalorder %s1199_s16, %s1195_s15 }
  0x15   : > { %p57_p6 = scmp.eq.s32.totalorder %s784_s23, 0  ;;  %s123_s30 = sadd.s32 1, %s1191_s14 }
  0x16   : > { %s1623_s26 = smov (%p36_p4, %s1621_s26), 0  ;;  %p133_p8 = scmp.ne.s32.totalorder %s1191_s14, %s1187_s13 }
  0x17   : > { %1590 = sst [smem:[#allocation14_spill]] %s1623_s26  ;;  %p1325_p7 = por %p57_p6, %p56_p5 }
  0x18   : > { %s38_s5 = ssub.s32 %s1219_s21, %s1623_s26  ;;  %p134_p9 = scmp.eq.s32.totalorder %s784_s23, 3 }
  0x19   : > { %s1591_s4 = scalar_select %p1325_p7, 1, 0 }
  0x1a   : > { %s40_s6 = sor.u32 %s39_s28, %s38_s5  ;;  %p121_p10 = scmp.eq.s32.totalorder %s38_s5, 0 }
  0x1b   : > { %p41_p11 = scmp.eq.s32.totalorder %s40_s6, 0  ;;  %p1333_p12 = por %p134_p9, %p133_p8 }
  0x1c   : > { %s1338_s8 = scalar_select %p121_p10, %s1191_s14, %s123_s30  }
  0x1d   : > { %s1592_s7 = scalar_select %p1333_p12, 1, 0 }
  0x1e   : > { %1593 = sst [smem:[#allocation15_spill]] %s1338_s8  ;;  %p139_p13 = scmp.ne.s32.totalorder %s1187_s13, %s1183_s12 }
  0x1f   : > { %s1341_s9 = scalar_select %p41_p11, %s1203_s17, %s43_s27  }
  0x20   : > { %p140_p0 = scmp.eq.s32.totalorder %s785_s24, 3  ;;  %p904_p1 = scmp.lt.s32.totalorder %s1223_s22, 4 }
  0x21   : > { %1594 = sst [smem:[#allocation16_spill]] %s1341_s9  ;;  %s1351_s11 = sand.u32 1, %s1203_s17  }
  0x22   : > { %p1346_p2 = por %p140_p0, %p139_p13  ;;  %s788_s15 = sshll.u32 %s1351_s11, 4 }
  0x23   : > { %s789_s23 = sshll.u32 %s1215_s20, 2  ;;  %s790_s28 = sshll.u32 %s1219_s21, 3 }
  0x24   : > { %s1595_s10 = scalar_select %p1346_p2, 1, 0 }
  0x25   : > { %s164_s30 = scalar_lea.vmem [#allocation3], %s788_s15  ;;  %s170_s27 = sadd.s32 %s790_s28, %s789_s23 }
  0x26   : > { %s174_s5 = sshll.u32 %s164_s30, 4  ;;  %s791_s6 = sshll.u32 %s170_s27, 6  ;;  %s1356_s5 = int_to_ptr.vmem [resolvable:$true] %s174_s5 }
  0x27   : > { %p1360_p4 = pnand %p904_p1, %p1317_p3  ;;  %s1597_s0 = sld [smem:[#allocation17_spill]] }
  0x28   : > { %s161_s15 = scalar_lea.sflag [#allocation4], %s1351_s11 }
  0x29   : > { %p1039_p3 = pneg %p1360_p4 }
  0x2d   : > { %s1367_s9 = scalar_lea.hbm %s1597_s0, %s791_s6  ;;  %s1042_s29 = scalar_lea.hbm %s1597_s0, 1024 }
  0x2e   : > { %s1037_s23 = scalar_lea.hbm %s1367_s9, 256  ;;  %p1043_p11 = scmp.lt.u32.totalorder %s1367_s9, %s1597_s0 }
  0x2f   : > { %p1038_p8 = scmp.ne.s32.totalorder %s1367_s9, %s1037_s23  ;;  %p1044_p13 = scmp.lt.u32.totalorder %s1042_s29, %s1037_s23 }
  0x30   : > { %p1046_p1 = scmp.lt.u32.totalorder %s1037_s23, %s1367_s9 }
  0x31   : > { %p1040_p9 = pnand %p1039_p3, %p1038_p8  ;;  %p1045_p0 = por %p1044_p13, %p1043_p11 }
  0x33   : > { %p1041_p10 = pneg %p1040_p9  ;;  %p1047_p5 = por %p1046_p1, %p1045_p0 }
  0x35   : > { %p1048_p6 = pnand %p1047_p5, %p1041_p10 }
  0x37   : > { %1051 = shalt.err (!%p1048_p6)
}
  0x38   : > { %s1052_s27 = scalar_lea.vmem %s1356_s5, 256  ;;  %s1225_s6 = smov [#allocation3]  }
  0x39   : > { %p1053_p8 = scmp.ne.s32.totalorder %s1356_s5, %s1052_s27  ;;  %s1057_s25 = sshll.u32 %s1225_s6, 4  ;;  %s1058_s25 = int_to_ptr.vmem [resolvable:$false] %s1057_s25 }
  0x3a   : > { %s1059_s26 = scalar_lea.vmem %s1058_s25, 512  ;;  %p1060_p12 = scmp.lt.s32.totalorder %s1356_s5, %s1058_s25 }
  0x3b   : > { %p1055_p9 = pnand %p1053_p8, %p1039_p3  ;;  %p1061_p11 = scmp.lt.s32.totalorder %s1059_s26, %s1052_s27 }
  0x3d   : > { %p1056_p2 = pneg %p1055_p9  ;;  %p1062_p13 = por %p1061_p11, %p1060_p12 }
  0x3f   : > { %p1063_p0 = pnand %p1062_p13, %p1056_p2 }
  0x41   : > { %1066 = shalt.err (!%p1063_p0)
}
  0x42   : > { %896 = dma.hbm_to_vmem [thread:$0]  (!%p1360_p4), %s1367_s9, 256, %s1356_s5, %s161_s15  }
  0x43   : > { %p1598_p5 = scmp.lt.s32.totalorder %s1223_s22, 5  ;;  %p1599_p6 = scmp.ge.s32.totalorder %s1223_s22, 1 }
  0x44   : > { %s792_s29 = sshll.u32 %s1351_s11, 8  ;;  %s793_s28 = sshll.u32 %s1215_s20, 6 }
  0x45   : > { %p1401_p10 = pnand %p1599_p6, %p1598_p5  ;;  %s794_s30 = sshll.u32 %s1219_s21, 7 }
  0x46   : > { %s191_s27 = sadd.s32 %s794_s30, %s793_s28  ;;  %s185_s6 = scalar_lea.vmem [#allocation6], %s792_s29 }
  0x47   : > { %s194_s25 = sshll.u32 %s185_s6, 4  ;;  %s795_s26 = sshll.u32 %s191_s27, 6  ;;  %s1408_s25 = int_to_ptr.vmem [resolvable:$true] %s194_s25 }
  0x48   : > { %s1413_s8 = scalar_lea.hbm %s1578_s1, %s795_s26  ;;  %s182_s9 = scalar_lea.sflag [#allocation7], %s1351_s11 }
  0x49   : > { %s1067_s5 = scalar_lea.hbm %s1413_s8, 4096  ;;  %s1072_s28 = scalar_lea.hbm %s1578_s1, 16384 }
  0x4a   : > { %p1068_p12 = scmp.ne.s32.totalorder %s1413_s8, %s1067_s5  ;;  %p1073_p8 = scmp.lt.u32.totalorder %s1413_s8, %s1578_s1 }
  0x4b   : > { %p1074_p9 = scmp.lt.u32.totalorder %s1072_s28, %s1067_s5  ;;  %p1076_p13 = scmp.lt.u32.totalorder %s1067_s5, %s1413_s8 }
  0x4c   : > { %p1070_p2 = pnand %p1068_p12, %p1039_p3 }
  0x4d   : > { %p1075_p11 = por %p1074_p9, %p1073_p8 }
  0x4e   : > { %p1071_p1 = pneg %p1070_p2 }
  0x4f   : > { %p1077_p0 = por %p1076_p13, %p1075_p11 }
  0x51   : > { %p1078_p5 = pnand %p1077_p0, %p1071_p1 }
  0x53   : > { %1081 = shalt.err (!%p1078_p5)
}
  0x54   : > { %s1082_s0 = scalar_lea.vmem %s1408_s25, 4096  ;;  %s1226_s17 = smov [#allocation6]  }
  0x55   : > { %p1083_p6 = scmp.ne.s32.totalorder %s1408_s25, %s1082_s0  ;;  %s1087_s6 = sshll.u32 %s1226_s17, 4  ;;  %s1088_s6 = int_to_ptr.vmem [resolvable:$false] %s1087_s6 }
  0x56   : > { %s1089_s26 = scalar_lea.vmem %s1088_s6, 8192  ;;  %p1090_p7 = scmp.lt.s32.totalorder %s1408_s25, %s1088_s6 }
  0x57   : > { %p1085_p12 = pnand %p1083_p6, %p1039_p3  ;;  %p1091_p8 = scmp.lt.s32.totalorder %s1089_s26, %s1082_s0 }
  0x59   : > { %p1086_p2 = pneg %p1085_p12  ;;  %p1092_p9 = por %p1091_p8, %p1090_p7 }
  0x5b   : > { %p1093_p11 = pnand %p1092_p9, %p1086_p2 }
  0x5d   : > { %1096 = shalt.err (!%p1093_p11)
}
  0x5e   : > { %s1227_s5 = smov 64   ;;  %s1228_s15 = smov 4  }
  0x5f   : > { %899 = dma.hbm_to_vmem [thread:$0]  (!%p1360_p4), %s1413_s8, 4096, %s1408_s25, %s182_s9, %s1227_s5, %s1227_s5, %s1228_s15  }
  0x60   : > { %212 = sbr.rel (%p1401_p10) target bundleno = 581 (0x245), region = 32  ;;  %s214_s29 = sand.u32 (!%p1401_p10), 1, %s1199_s16  }
  0x61   : > { %s797_s28 = sshll.u32 (!%p1401_p10), %s214_s29, 4  ;;  %s215_s30 = scalar_lea.sflag (!%p1401_p10), [#allocation4], %s214_s29 }
  0x62   : > { %s1444_s27 = scalar_lea.vmem (!%p1401_p10), [#allocation3], %s797_s28  ;;  %p1601_p7 = scmp.ne.s32.totalorder (!%p1401_p10), %s1591_s4, 0 }
  0x67   : > { %1170 = dma.done.wait (%p1601_p7), %s215_s30, 256  }
  0x68   : > { %1172 = vsyncadd (%p1601_p7), %s215_s30, 4294967040  ;;  %s798_s0 = sshll.u32 %s214_s29, 8  ;;  %s224_s24 = scalar_lea.sflag [#allocation7], %s214_s29 }
  0x69   : > { %s1450_s11 = scalar_lea.vmem [#allocation6], %s798_s0 }
  0x6a   : > { %1174 = dma.done.wait (%p1601_p7), %s224_s24, 4096  }
  0x6b   : > { %1176 = vsyncadd (%p1601_p7), %s224_s24, 4294963200  ;;  %s255_s8 = sand.u32 1, %s1187_s13   ;;  %p260_p4 = scmp.lt.s32.totalorder %s1211_s19, 1 }
  0x6c   : > { %s1460_s23 = sshll.u32 %s255_s8, 3  ;;  %p800_p3 = scmp.ne.s32.totalorder %s1207_s18, 0 }
  0x6d   : > { %s1463_s25 = scalar_select %p260_p4, %s1211_s19, 1 }
  0x6e   : > { %s257_s26 = scalar_lea.vmem [#allocation8], %s1460_s23  ;;  %267 = sbr.rel (%p800_p3) target bundleno = 117 (0x75), region = 44  ;;  %v1229_v0 = vmov (!%p800_p3), 0.0  }
  0x6f   : > { %s262_s6 = scalar_lea.vmem %s1579_s2, %s1463_s25  ;;  %268 = vst [vmem:[#allocation2] sm:$0xff] (!%p800_p3), %v1229_v0 }
  0x75 PF: > { %v997_v1 = vld [vmem:[%s1450_s11 + $0x40] sm:$0xff]   ;;  %v1001_v5 = vld [vmem:[%s1450_s11 + $0x48] sm:$0xff]   ;;  %v1005_v9 = vld [vmem:[%s1450_s11 + $0x50] sm:$0xff]   ;;  %p837_p10 = scmp.ne.s32.totalorder %s1207_s18, 1 }
  0x76   : > { %v998_v2 = vld [vmem:[%s1450_s11 + $0xc0] sm:$0xff]   ;;  %843 = vmatprep.subr.bf16.mxu0 %v997_v1  ;;  %v1002_v6 = vld [vmem:[%s1450_s11 + $0xc8] sm:$0xff]   ;;  %v1006_v10 = vld [vmem:[%s1450_s11 + $0xd0] sm:$0xff]  }
  0x77   : > { %v999_v3 = vld [vmem:[%s1450_s11] sm:$0xff]   ;;  %865 = vmatprep.subr.bf16.mxu1 %v998_v2  ;;  %v1003_v7 = vld [vmem:[%s1450_s11 + $0x8] sm:$0xff]   ;;  %v1007_v11 = vld [vmem:[%s1450_s11 + $0x10] sm:$0xff]  }
  0x78   : > { %v1000_v4 = vld [vmem:[%s1450_s11 + $0x80] sm:$0xff]   ;;  %844 = vmatpush3.bf16.msra.mxu0 %v999_v3  ;;  %v1004_v8 = vld [vmem:[%s1450_s11 + $0x88] sm:$0xff]   ;;  %v1008_v12 = vld [vmem:[%s1450_s11 + $0x90] sm:$0xff]  }
  0x79   : > { %866 = vmatpush3.bf16.msra.mxu1 %v1000_v4  ;;  %845 = vmatprep.subr.bf16.mxu0 %v1001_v5  ;;  %v1009_v13 = vld [vmem:[%s1450_s11 + $0x58] sm:$0xff]   ;;  %v1013_v17 = vld [vmem:[%s1450_s11 + $0x60] sm:$0xff]   ;;  %v1017_v21 = vld [vmem:[%s1450_s11 + $0x68] sm:$0xff]  }
  0x7a   : > { %867 = vmatprep.subr.bf16.mxu1 %v1002_v6  ;;  %v1010_v14 = vld [vmem:[%s1450_s11 + $0xd8] sm:$0xff]   ;;  %v1014_v18 = vld [vmem:[%s1450_s11 + $0xe0] sm:$0xff]   ;;  %v1018_v22 = vld [vmem:[%s1450_s11 + $0xe8] sm:$0xff]  }
  0x7b   : > { %v1011_v15 = vld [vmem:[%s1450_s11 + $0x18] sm:$0xff]   ;;  %v1015_v19 = vld [vmem:[%s1450_s11 + $0x20] sm:$0xff]   ;;  %v1019_v23 = vld [vmem:[%s1450_s11 + $0x28] sm:$0xff]  }
  0x7c   : > { %846 = vmatpush3.bf16.msra.mxu0 %v1003_v7  ;;  %v1012_v16 = vld [vmem:[%s1450_s11 + $0x98] sm:$0xff]   ;;  %v1016_v20 = vld [vmem:[%s1450_s11 + $0xa0] sm:$0xff]   ;;  %v1020_v24 = vld [vmem:[%s1450_s11 + $0xa8] sm:$0xff]  }
  0x7d   : > { %868 = vmatpush3.bf16.msra.mxu1 %v1004_v8  ;;  %847 = vmatprep.subr.bf16.mxu0 %v1005_v9  ;;  %v1021_v25 = vld [vmem:[%s1450_s11 + $0x70] sm:$0xff]   ;;  %v1025_v29 = vld [vmem:[%s1450_s11 + $0x78] sm:$0xff]  }
  0x7e   : > { %869 = vmatprep.subr.bf16.mxu1 %v1006_v10  ;;  %v1022_v26 = vld [vmem:[%s1450_s11 + $0xf0] sm:$0xff]   ;;  %v1026_v30 = vld [vmem:[%s1450_s11 + $0xf8] sm:$0xff]  }
  0x7f   : > { %v1023_v27 = vld [vmem:[%s1450_s11 + $0x30] sm:$0xff]   ;;  %v1027_v31 = vld [vmem:[%s1450_s11 + $0x38] sm:$0xff]  }
  0x80   : > { %848 = vmatpush3.bf16.msra.mxu0 %v1007_v11  ;;  %v1024_v28 = vld [vmem:[%s1450_s11 + $0xb0] sm:$0xff]   ;;  %v1028_v32 = vld [vmem:[%s1450_s11 + $0xb8] sm:$0xff]  }
  0x81   : > { %870 = vmatpush3.bf16.msra.mxu1 %v1008_v12  ;;  %849 = vmatprep.subr.bf16.mxu0 %v1009_v13  ;;  %v270_v33 = vld [vmem:[%s1444_s27] sm:$0xff]  ;;  %v271_v34 = vld [vmem:[%s1444_s27 + $0x8] sm:$0xff] }
  0x82   : > { %871 = vmatprep.subr.bf16.mxu1 %v1010_v14  ;;  %v801_v35 = vcombine.low %v270_v33, %v270_v33  ;;  %v802_v36 = vcombine.high %v270_v33, %v270_v33  ;;  %v803_v37 = vcombine.low %v271_v34, %v271_v34  ;;  %v804_v38 = vcombine.high %v271_v34, %v271_v34  ;;  %v269_v47 = vld [vmem:[#allocation2] sm:$0xff] }
  0x83   : > { %v838_v53 = vld [vmem:[%s262_s6] ss:$0 sm:$0xff] (!%p837_p10) }
  0x84   : > { %850 = vmatpush3.bf16.msra.mxu0 %v1011_v15  ;;  %574 = vmatprep.mubr.bf16.mxu0 %v802_v36 }
  0x85   : > { %872 = vmatpush3.bf16.msra.mxu1 %v1012_v16  ;;  %851 = vmatprep.subr.bf16.mxu0 %v1013_v17 }
  0x86   : > { %873 = vmatprep.subr.bf16.mxu1 %v1014_v18  ;;  %614 = vmatprep.mubr.bf16.mxu1 %v804_v38 }
  0x88   : > { %852 = vmatpush3.bf16.msra.mxu0 %v1015_v19 }
  0x89   : > { %874 = vmatpush3.bf16.msra.mxu1 %v1016_v20  ;;  %853 = vmatprep.subr.bf16.mxu0 %v1017_v21 }
  0x8a   : > { %875 = vmatprep.subr.bf16.mxu1 %v1018_v22 }
  0x8c   : > { %854 = vmatpush3.bf16.msra.mxu0 %v1019_v23 }
  0x8d   : > { %876 = vmatpush3.bf16.msra.mxu1 %v1020_v24  ;;  %855 = vmatprep.subr.bf16.mxu0 %v1021_v25 }
  0x8e   : > { %877 = vmatprep.subr.bf16.mxu1 %v1022_v26 }
  0x90   : > { %856 = vmatpush3.bf16.msra.mxu0 %v1023_v27 }
  0x91   : > { %878 = vmatpush3.bf16.msra.mxu1 %v1024_v28  ;;  %857 = vmatprep.subr.bf16.mxu0 %v1025_v29 }
  0x92   : > { %879 = vmatprep.subr.bf16.mxu1 %v1026_v30 }
  0x94   : > { %858 = vmatpush3.bf16.msra.mxu0 %v1027_v31 }
  0x95   : > { %880 = vmatpush3.bf16.msra.mxu1 %v1028_v32 }
  0x97   : > { %575 = vmatmul.mubr.bf16.vlgmr.msra.gmra.mrb[0].mxu0 %v801_v35 }
  0x98   : > { %615 = vmatmul.mubr.bf16.vlgmr.msra.gmra.mrb[0].mxu1 %v803_v37 }
 0x16a   : > { %v859_v39 = vpop.f32.mrb[0].mxu0 }
 0x16b   : > { %v881_v40 = vpop.f32.mrb[0].mxu1  ;;  %v860_v41 = vpop.f32.mrb[1].mxu0 }
 0x16c   : > { %v882_v42 = vpop.f32.mrb[1].mxu1  ;;  %v861_v43 = vadd.f32 %v860_v41, %v859_v39  ;;  %v862_v45 = vpop.f32.mrb[2].mxu0 }
 0x16d   : > { %v883_v44 = vadd.f32 %v882_v42, %v881_v40  ;;  %v884_v46 = vpop.f32.mrb[2].mxu1  ;;  %v863_v48 = vpop.f32.mrb[3].mxu0  ;;  %627 = sbr.rel (%p837_p10) target bundleno = 556 (0x22c), region = 48 }
 0x16e   : > { %v885_v49 = vpop.f32.mrb[3].mxu1 }
 0x16f   : > { %v617_v50 = vadd.f32 %v883_v44, %v861_v43 }
 0x171   : > { %v622_v51 = vadd.f32 %v617_v50, %v269_v47 }
 0x173   : > { %623 = vst [vmem:[#allocation2] sm:$0xff] %v622_v51 }
 0x17a   : > { %v628_v52 = vld [vmem:[#allocation2] sm:$0xff] }
 0x17b   : > { %v636_v54 = vadd.f32 %v838_v53, %v628_v52 }
 0x17d   : > { %v637_v55 = vmul.f32 %v636_v54, %v636_v54 }
 0x17f   : > { %638 = vadd.xlane.f32.xlu0 %v637_v55 }
 0x20c   : > { %v639_v56 = vpop.xlane.xlu0 %638 }
 0x20d   : > { %1033 = vrsqrt.f32 %v639_v56  ;;  %vm642_vm0 = vcmp.eq.f32.partialorder %v639_v56, inf  ;;  %v645_v59 = vand.u32 2147483648, %v639_v56  ;;  %vm644_vm1 = vcmp.eq.f32.partialorder %v639_v56, 0.0 }
 0x217   : > { %v1034_v57 = vpop.eup %1033 }
 0x218   : > { %v641_v58 = vmul.f32 %v1034_v57, %v639_v56 }
 0x21a   : > { %v643_v60 = vsel %vm642_vm0, %v639_v56, %v641_v58 }
 0x21b   : > { %v646_v61 = vsel %vm644_vm1, %v645_v59, %v643_v60 }
 0x21c   : > { %v647_v62 = vmax.f32 %v646_v61, 1e-12 }
 0x21e   : > { %1035 = vrcp.f32 %v647_v62 }
 0x228   : > { %v1036_v63 = vpop.eup %1035 }
 0x229   : > { %v649_v0 = vmul.f32 %v1036_v63, %v636_v54 }
 0x22b   : > { %650 = vst [vmem:[%s257_s26] sm:$0xff] %v649_v0 }
 0x22c PF: > { %s840_s18 = sshll.u32 %s1211_s19, 7  ;;  %s665_s30 = sshll.u32 %s257_s26, 4  ;;  %s666_s30 = int_to_ptr.vmem [resolvable:$true] %s665_s30 }
 0x22d   : > { %s1517_s28 = scalar_lea.hbm %s1580_s3, %s840_s18  ;;  %s652_s27 = scalar_lea.sflag [#allocation5], %s255_s8 }
 0x22e   : > { %s1097_s0 = scalar_lea.vmem %s666_s30, 128  ;;  %p1602_p13 = scmp.ne.s32.totalorder %s1592_s7, 0 }
 0x22f   : > { %p1098_p1 = scmp.ne.s32.totalorder %s666_s30, %s1097_s0  ;;  %s1230_s24 = smov [#allocation8]  }
 0x230   : > { %s1101_s11 = sshll.u32 %s1230_s24, 4  ;;  %s1102_s11 = int_to_ptr.vmem [resolvable:$false] %s1101_s11 }
 0x231   : > { %p1099_p0 = pnand %p1098_p1, %p1602_p13  ;;  %s1103_s25 = scalar_lea.vmem %s1102_s11, 256 }
 0x232   : > { %p1104_p6 = scmp.lt.s32.totalorder %s666_s30, %s1102_s11  ;;  %p1105_p12 = scmp.lt.s32.totalorder %s1103_s25, %s1097_s0 }
 0x233   : > { %p1100_p5 = pneg %p1099_p0 }
 0x234   : > { %p1106_p2 = por %p1105_p12, %p1104_p6 }
 0x236   : > { %p1107_p8 = pnand %p1106_p2, %p1100_p5 }
 0x238   : > { %1110 = shalt.err (!%p1107_p8)
}
 0x239   : > { %s1111_s19 = scalar_lea.hbm %s1517_s28, 128  ;;  %s1115_s9 = scalar_lea.hbm %s1580_s3, 256 }
 0x23a   : > { %p1112_p9 = scmp.ne.s32.totalorder %s1517_s28, %s1111_s19  ;;  %p1116_p4 = scmp.lt.u32.totalorder %s1517_s28, %s1580_s3 }
 0x23b   : > { %p1117_p3 = scmp.lt.u32.totalorder %s1115_s9, %s1111_s19  ;;  %p1119_p1 = scmp.lt.u32.totalorder %s1111_s19, %s1517_s28 }
 0x23c   : > { %p1113_p11 = pnand %p1112_p9, %p1602_p13 }
 0x23d   : > { %p1118_p10 = por %p1117_p3, %p1116_p4 }
 0x23e   : > { %p1114_p7 = pneg %p1113_p11 }
 0x23f   : > { %p1120_p0 = por %p1119_p1, %p1118_p10 }
 0x241   : > { %p1121_p5 = pnand %p1120_p0, %p1114_p7 }
 0x243   : > { %1124 = shalt.err (!%p1121_p5)
}
 0x244   : > { %891 = dma.vmem_to_hbm [thread:$0]  (%p1602_p13), %s666_s30, 128, %s1517_s28, %s652_s27  }
 0x245 PF: > { %p905_p6 = scmp.ge.s32.totalorder %s1223_s22, 2  ;;  %s677_s26 = sand.u32 1, %s1183_s12  }
 0x246   : > { %p1603_p12 = scmp.ne.s32.totalorder %s1595_s10, 0  ;;  %s678_s4 = scalar_lea.sflag [#allocation5], %s677_s26 }
 0x248   : > { %p901_p2 = pnand %p905_p6, %p1603_p12 }
 0x24a   : > { %1178 = dma.done.wait (!%p901_p2), %s678_s4, 128  }
 0x24b   : > { %1180 = vsyncadd (!%p901_p2), %s678_s4, 4294967168  ;;  %s22_s22 = sadd.s32 1, %s1223_s22   ;;  %s1604_s5 = sld [smem:[#allocation15_spill]] }
 0x24c   : > { %p19_p8 = scmp.ge.s32.totalorder %s22_s22, 6   ;;  %s1605_s7 = sld [smem:[#allocation12_spill]] }
 0x24d   : > { %s1606_s17 = sld [smem:[#allocation16_spill]]  ;;  %s1607_s29 = sld [smem:[#allocation13_spill]] }
 0x24e   : > { %s1608_s28 = sld [smem:[#allocation14_spill]]  ;;  %s1609_s12 = smov %s1187_s13 }
 0x24f   : > { %s1610_s13 = smov %s1191_s14  ;;  %s1612_s15 = smov %s1199_s16 }
 0x250   : > { %s1614_s18 = smov %s1215_s20  ;;  %s1615_s19 = smov %s1219_s21 }
 0x251   : > { %s1611_s14 = smov %s1604_s5  ;;  %21 = sbr.rel (!%p19_p8) target bundleno = 13 (0xd), region = 101 }
 0x252   : > { %s1613_s16 = smov %s1605_s7 }
 0x253   : > { %s1616_s20 = smov %s1607_s29 }
 0x254   : > { %s1617_s21 = smov %s1608_s28 }
 0x258   :  { %683 = vsyncpa [#allocation4], 1 }
 0x259   :  { %685 = vsyncpa [#allocation4 + $0x1], 1 }
 0x25a   :  { %686 = vsyncpa [#allocation7], 1 }
 0x25b   :  { %688 = vsyncpa [#allocation7 + $0x1], 1 }
 0x25c   :  { %689 = vsyncpa [#allocation5], 1 }
 0x25d   :  { %691 = vsyncpa [#allocation5 + $0x1], 1 }

</bundles_post_ra>
